<compile_context>
chip_gen: v5e
topology: v5e:2x2
jax: 0.10.0
libtpu: 0.0.40
codegen_flags: <defaults>
</compile_context>

<pallas_src>
import numpy as np
import jax
import jax.numpy as jnp
from jax.experimental import pallas as pl
from jax.experimental.pallas import tpu as pltpu


def _sublane_granule(dtype):
    """Minimum sublane multiple for a dtype's (g, 128) tile."""
    return {1: 32, 2: 16, 4: 8}[jnp.dtype(dtype).itemsize]


def _choose_tiles(N, R, granule, target_block_bytes=4 << 20):
    """Pick (samples_per_block, rows_per_chunk).

    Targets ~4 MiB of f32 per input block (2 inputs x 2 pipeline buffers
    -> ~16 MiB, inside the scoped-VMEM budget on v5e/v6e/v7x) and keeps the
    parallel (sample-block) grid axis >= 2 wide when N >= 2 so both v7x
    TensorCores get work.
    """
    row_bytes = 128 * 4
    max_rows = max(granule, target_block_bytes // row_bytes)
    if R <= max_rows:
        rc = -(-R // granule) * granule          # round R up to the granule
        bn = max(1, min(N, target_block_bytes // max(1, rc * row_bytes)))
        if N >= 2:
            bn = min(bn, N // 2)                 # keep >= 2 parallel blocks
        bn = max(1, bn)
        while N % bn:                            # bn must divide N
            bn -= 1
    else:
        bn = 1
        rc = (max_rows // granule) * granule
    # TODO(synk): when N == 1 and R is large, split R into two "parallel"
    # halves with separate partial outputs so v7x's second core is not idle.
    return int(bn), int(rc)


def _pad_reshape(a, N, D, R_pad, pad_value):
    """Flatten per-sample dims, pad to R_pad*128 elements, reshape to lanes."""
    flat = a.reshape(N, D)
    pad = R_pad * 128 - D
    if pad:
        flat = jnp.pad(flat, ((0, 0), (0, pad)), constant_values=pad_value)
    return flat.reshape(N, R_pad, 128)


def _bce_dice_kernel(x_ref, t_ref, o_bce, o_inter, o_denom,
                     bce_acc, inter_acc, denom_acc):
    r = pl.program_id(1)

    @pl.when(r == 0)
    def _():
        bce_acc[...] = jnp.zeros_like(bce_acc)
        inter_acc[...] = jnp.zeros_like(inter_acc)
        denom_acc[...] = jnp.zeros_like(denom_acc)

    x = x_ref[...]                              # (bn, rc, 128) f32
    t = t_ref[...].astype(jnp.float32)          # caller-native dtype -> f32

    # shared transcendental: e = exp(-|x|) feeds both BCE and sigmoid
    e = jnp.exp(-jnp.abs(x))
    one_plus_e = 1.0 + e
    # numerically-stable BCE-with-logits, elementwise
    bce_elem = jnp.maximum(x, 0.0) - x * t + jnp.log(one_plus_e)
    # sigmoid rebuilt from the shared exp: 1/(1+e) if x>=0 else e/(1+e)
    inv = pl.reciprocal(one_plus_e, approx=False)
    p = jnp.where(x >= 0.0, inv, e * inv)

    # row-reduce (XLU) before accumulating into tiny (bn, 128) accumulators:
    # no full-block read-modify-write -> the vst slot stays free for the DMA.
    bce_acc[...] += jnp.sum(bce_elem, axis=1)
    inter_acc[...] += jnp.sum(p * t, axis=1)
    denom_acc[...] += jnp.sum(p + t, axis=1)

    @pl.when(r == pl.num_programs(1) - 1)
    def _():
        # lane-dense (bn, 128) stores; final cross-lane reduce is a tiny JAX
        # epilogue (also keeps per-lane partial sums for better accumulation
        # accuracy on huge tensors).
        o_bce[0] = bce_acc[...]
        o_inter[0] = inter_acc[...]
        o_denom[0] = denom_acc[...]


def bce_dice_loss(logits, truth, smooth=1.0):
    """logits, truth: (N, C, H, W) arrays. Returns scalar f32 loss."""
    N = logits.shape[0]
    D = int(np.prod(logits.shape[1:]))

    x_full = logits.astype(jnp.float32)
    # truth stays in its caller-native dtype (0/1 values exactly representable
    # in bf16/int8/bool) -- no extra wrapper-side HBM pass; cast in-kernel.
    granule = max(_sublane_granule(jnp.float32), _sublane_granule(truth.dtype))

    R = -(-D // 128)
    bn, rc = _choose_tiles(N, R, granule)
    R_pad = -(-R // rc) * rc

    # pad with very-negative logits / zero targets: exp(-|x|)=0, max(x,0)=0,
    # x*t=0, p=0  =>  exactly zero contribution to every partial sum.
    x = _pad_reshape(x_full, N, D, R_pad, -1e9)
    t = _pad_reshape(truth, N, D, R_pad, 0)

    grid = (N // bn, R_pad // rc)

    in_spec = pl.BlockSpec((bn, rc, 128), lambda s, r: (s, r, 0))
    out_spec = pl.BlockSpec((1, bn, 128), lambda s, r: (s, 0, 0))
    out_sds = jax.ShapeDtypeStruct((N // bn, bn, 128), jnp.float32)

    # VMEM budget from the actual footprint (2 pipeline buffers per input),
    # kept <= 48 MiB so it also fits v7x's 64 MiB physical VMEM with headroom.
    in_bytes = bn * rc * 128 * (4 + jnp.dtype(truth.dtype).itemsize)
    vmem_limit = int(min(48 << 20, max(16 << 20, 3 * in_bytes)))

    out_bce, out_inter, out_denom = pl.pallas_call(
        _bce_dice_kernel,
        out_shape=(out_sds, out_sds, out_sds),
        grid_spec=pltpu.PrefetchScalarGridSpec(
            num_scalar_prefetch=0,
            grid=grid,
            in_specs=[in_spec, in_spec],
            out_specs=(out_spec, out_spec, out_spec),
            scratch_shapes=[pltpu.VMEM((bn, 128), jnp.float32)] * 3,
        ),
        compiler_params=pltpu.CompilerParams(
            dimension_semantics=("parallel", "arbitrary"),
            vmem_limit_bytes=vmem_limit,
        ),
    )(x, t)

    # tiny epilogue: final lane reduce + mean / dice combination
    bce_mean = jnp.sum(out_bce) / jnp.float32(N * D)     # true element count
    inter = jnp.sum(out_inter.reshape(N, 128), axis=-1)
    denom = jnp.sum(out_denom.reshape(N, 128), axis=-1)
    dice = (2.0 * inter + smooth) / (denom + smooth)
    return bce_mean + (1.0 - jnp.mean(dice))


def _reference(logits, truth, smooth=1.0):
    x = logits.astype(jnp.float32)
    t = truth.astype(jnp.float32)
    bce = jnp.mean(jnp.maximum(x, 0.0) - x * t + jnp.log1p(jnp.exp(-jnp.abs(x))))
    N = x.shape[0]
    p = jax.nn.sigmoid(x).reshape(N, -1)
    tf = t.reshape(N, -1)
    dice = (2.0 * jnp.sum(p * tf, axis=1) + smooth) / (
        jnp.sum(p, axis=1) + jnp.sum(tf, axis=1) + smooth)
    return bce + (1.0 - jnp.mean(dice))


if __name__ == "__main__":
    key = jax.random.PRNGKey(0)
    loss_fn = jax.jit(bce_dice_loss)

    # case 1: the module's natural shape (C*H*W is a multiple of 128)
    k1, k2, k3, k4 = jax.random.split(key, 4)
    N, C, H, W = 2, 4, 16, 16
    logits = jax.random.normal(k1, (N, C, H, W), dtype=jnp.float32)
    truth = jax.random.bernoulli(k2, 0.5, (N, C, H, W)).astype(jnp.float32)
    loss = jax.block_until_ready(loss_fn(logits, truth))
    ref = jax.block_until_ready(_reference(logits, truth))
    assert np.isfinite(float(loss))
    np.testing.assert_allclose(float(loss), float(ref), rtol=1e-5, atol=1e-5)

    # case 2: awkward shape (C*H*W = 231, not a multiple of 128) -> pad path
    logits2 = jax.random.normal(k3, (2, 3, 7, 11), dtype=jnp.float32)
    truth2 = jax.random.bernoulli(k4, 0.5, (2, 3, 7, 11)).astype(jnp.float32)
    loss2 = jax.block_until_ready(jax.jit(bce_dice_loss)(logits2, truth2))
    ref2 = jax.block_until_ready(_reference(logits2, truth2))
    assert np.isfinite(float(loss2))
    np.testing.assert_allclose(float(loss2), float(ref2), rtol=1e-5, atol=1e-5)

    print("KERNEL_OK")
</pallas_src>

<mosaic_0001>
module attributes {stable_mosaic.version = 11 : i64} {
  func.func @_bce_dice_kernel(%arg0: i32, %arg1: i32, %arg2: memref<1x8x128xf32, #tpu.memory_space<vmem>>, %arg3: memref<1x8x128xf32, #tpu.memory_space<vmem>>, %arg4: memref<1x1x128xf32, #tpu.memory_space<vmem>>, %arg5: memref<1x1x128xf32, #tpu.memory_space<vmem>>, %arg6: memref<1x1x128xf32, #tpu.memory_space<vmem>>, %arg7: memref<1x128xf32, #tpu.memory_space<vmem>>, %arg8: memref<1x128xf32, #tpu.memory_space<vmem>>, %arg9: memref<1x128xf32, #tpu.memory_space<vmem>>) attributes {dimension_semantics = [#tpu.dimension_semantics<parallel>, #tpu.dimension_semantics<arbitrary>], iteration_bounds = array<i64: 2, 1>, scalar_prefetch = 0 : i64, scratch_operands = 3 : i64, tpu.core_type = #tpu.core_type<tc>, window_params = [{transform_indices = @transform_0, window_bounds = array<i64: 1, 8, 128>}, {transform_indices = @transform_1, window_bounds = array<i64: 1, 8, 128>}, {transform_indices = @transform_2, window_bounds = array<i64: 1, 1, 128>}, {transform_indices = @transform_3, window_bounds = array<i64: 1, 1, 128>}, {transform_indices = @transform_4, window_bounds = array<i64: 1, 1, 128>}]} {
    %c0_i32 = arith.constant 0 : i32
    %0 = arith.cmpi eq, %arg1, %c0_i32 : i32
    %1 = arith.extui %0 : i1 to i32
    %c0_i32_0 = arith.constant 0 : i32
    %2 = arith.cmpi ne, %1, %c0_i32_0 : i32
    scf.if %2 {
      %cst_26 = arith.constant 0.000000e+00 : f32
      %39 = vector.broadcast %cst_26 : f32 to vector<1x128xf32>
      %c0_27 = arith.constant 0 : index
      %c0_28 = arith.constant 0 : index
      %40 = vector.load %arg7[%c0_27, %c0_28] : memref<1x128xf32, #tpu.memory_space<vmem>>, vector<1x128xf32>
      tpu.vector_store %arg7[%c0_27, %c0_28], %39 {strides = array<i32>} : memref<1x128xf32, #tpu.memory_space<vmem>>, vector<1x128xf32>,
      %cst_29 = arith.constant 0.000000e+00 : f32
      %41 = vector.broadcast %cst_29 : f32 to vector<1x128xf32>
      %c0_30 = arith.constant 0 : index
      %c0_31 = arith.constant 0 : index
      %42 = vector.load %arg8[%c0_30, %c0_31] : memref<1x128xf32, #tpu.memory_space<vmem>>, vector<1x128xf32>
      tpu.vector_store %arg8[%c0_30, %c0_31], %41 {strides = array<i32>} : memref<1x128xf32, #tpu.memory_space<vmem>>, vector<1x128xf32>,
      %cst_32 = arith.constant 0.000000e+00 : f32
      %43 = vector.broadcast %cst_32 : f32 to vector<1x128xf32>
      %c0_33 = arith.constant 0 : index
      %c0_34 = arith.constant 0 : index
      %44 = vector.load %arg9[%c0_33, %c0_34] : memref<1x128xf32, #tpu.memory_space<vmem>>, vector<1x128xf32>
      tpu.vector_store %arg9[%c0_33, %c0_34], %43 {strides = array<i32>} : memref<1x128xf32, #tpu.memory_space<vmem>>, vector<1x128xf32>,
    } else {
    }
    %c0 = arith.constant 0 : index
    %c0_1 = arith.constant 0 : index
    %c0_2 = arith.constant 0 : index
    %3 = vector.load %arg2[%c0, %c0_1, %c0_2] : memref<1x8x128xf32, #tpu.memory_space<vmem>>, vector<1x8x128xf32>
    %c0_3 = arith.constant 0 : index
    %c0_4 = arith.constant 0 : index
    %c0_5 = arith.constant 0 : index
    %4 = vector.load %arg3[%c0_3, %c0_4, %c0_5] : memref<1x8x128xf32, #tpu.memory_space<vmem>>, vector<1x8x128xf32>
    %5 = math.absf %3 : vector<1x8x128xf32>
    %cst = arith.constant 0.000000e+00 : f32
    %6 = vector.broadcast %cst : f32 to vector<1x8x128xf32>
    %7 = arith.subf %6, %5 : vector<1x8x128xf32>
    %8 = math.exp %7 : vector<1x8x128xf32>
    %cst_6 = arith.constant 1.000000e+00 : f32
    %9 = vector.broadcast %cst_6 : f32 to vector<1x8x128xf32>
    %10 = arith.addf %9, %8 : vector<1x8x128xf32>
    %cst_7 = arith.constant 0.000000e+00 : f32
    %11 = vector.broadcast %cst_7 : f32 to vector<1x8x128xf32>
    %12 = arith.maximumf %3, %11 : vector<1x8x128xf32>
    %13 = arith.mulf %3, %4 : vector<1x8x128xf32>
    %14 = arith.subf %12, %13 : vector<1x8x128xf32>
    %15 = math.log %10 : vector<1x8x128xf32>
    %16 = arith.addf %14, %15 : vector<1x8x128xf32>
    %17 = tpu.reciprocal %10 : vector<1x8x128xf32> -> vector<1x8x128xf32>
    %cst_8 = arith.constant 0.000000e+00 : f32
    %18 = vector.broadcast %cst_8 : f32 to vector<1x8x128xf32>
    %19 = arith.cmpf oge, %3, %18 : vector<1x8x128xf32>
    %20 = arith.mulf %8, %17 : vector<1x8x128xf32>
    %21 = arith.select %19, %17, %20 : vector<1x8x128xi1>, vector<1x8x128xf32>
    %c0_9 = arith.constant 0 : index
    %c0_10 = arith.constant 0 : index
    %22 = vector.load %arg7[%c0_9, %c0_10] : memref<1x128xf32, #tpu.memory_space<vmem>>, vector<1x128xf32>
    %cst_11 = arith.constant dense<0.000000e+00> : vector<1x128xf32>
    %23 = vector.multi_reduction <add>, %16, %cst_11 [1] : vector<1x8x128xf32> to vector<1x128xf32>
    %24 = arith.addf %22, %23 : vector<1x128xf32>
    %c0_12 = arith.constant 0 : index
    %c0_13 = arith.constant 0 : index
    %25 = vector.load %arg7[%c0_12, %c0_13] : memref<1x128xf32, #tpu.memory_space<vmem>>, vector<1x128xf32>
    tpu.vector_store %arg7[%c0_12, %c0_13], %24 {strides = array<i32>} : memref<1x128xf32, #tpu.memory_space<vmem>>, vector<1x128xf32>,
    %c0_14 = arith.constant 0 : index
    %c0_15 = arith.constant 0 : index
    %26 = vector.load %arg8[%c0_14, %c0_15] : memref<1x128xf32, #tpu.memory_space<vmem>>, vector<1x128xf32>
    %27 = arith.mulf %21, %4 : vector<1x8x128xf32>
    %cst_16 = arith.constant dense<0.000000e+00> : vector<1x128xf32>
    %28 = vector.multi_reduction <add>, %27, %cst_16 [1] : vector<1x8x128xf32> to vector<1x128xf32>
    %29 = arith.addf %26, %28 : vector<1x128xf32>
    %c0_17 = arith.constant 0 : index
    %c0_18 = arith.constant 0 : index
    %30 = vector.load %arg8[%c0_17, %c0_18] : memref<1x128xf32, #tpu.memory_space<vmem>>, vector<1x128xf32>
    tpu.vector_store %arg8[%c0_17, %c0_18], %29 {strides = array<i32>} : memref<1x128xf32, #tpu.memory_space<vmem>>, vector<1x128xf32>,
    %c0_19 = arith.constant 0 : index
    %c0_20 = arith.constant 0 : index
    %31 = vector.load %arg9[%c0_19, %c0_20] : memref<1x128xf32, #tpu.memory_space<vmem>>, vector<1x128xf32>
    %32 = arith.addf %21, %4 : vector<1x8x128xf32>
    %cst_21 = arith.constant dense<0.000000e+00> : vector<1x128xf32>
    %33 = vector.multi_reduction <add>, %32, %cst_21 [1] : vector<1x8x128xf32> to vector<1x128xf32>
    %34 = arith.addf %31, %33 : vector<1x128xf32>
    %c0_22 = arith.constant 0 : index
    %c0_23 = arith.constant 0 : index
    %35 = vector.load %arg9[%c0_22, %c0_23] : memref<1x128xf32, #tpu.memory_space<vmem>>, vector<1x128xf32>
    tpu.vector_store %arg9[%c0_22, %c0_23], %34 {strides = array<i32>} : memref<1x128xf32, #tpu.memory_space<vmem>>, vector<1x128xf32>,
    %c0_i32_24 = arith.constant 0 : i32
    %36 = arith.cmpi eq, %arg1, %c0_i32_24 : i32
    %37 = arith.extui %36 : i1 to i32
    %c0_i32_25 = arith.constant 0 : i32
    %38 = arith.cmpi ne, %37, %c0_i32_25 : i32
    scf.if %38 {
      %c0_26 = arith.constant 0 : index
      %c0_27 = arith.constant 0 : index
      %39 = vector.load %arg7[%c0_26, %c0_27] : memref<1x128xf32, #tpu.memory_space<vmem>>, vector<1x128xf32>
      %c0_28 = arith.constant 0 : index
      %c0_29 = arith.constant 0 : index
      %c0_30 = arith.constant 0 : index
      %40 = vector.load %arg4[%c0_28, %c0_29, %c0_30] : memref<1x1x128xf32, #tpu.memory_space<vmem>>, vector<1x1x128xf32>
      %41 = vector.shape_cast %40 : vector<1x1x128xf32> to vector<1x128xf32>
      %42 = vector.shape_cast %39 : vector<1x128xf32> to vector<1x1x128xf32>
      tpu.vector_store %arg4[%c0_28, %c0_29, %c0_30], %42 {strides = array<i32>} : memref<1x1x128xf32, #tpu.memory_space<vmem>>, vector<1x1x128xf32>,
      %c0_31 = arith.constant 0 : index
      %c0_32 = arith.constant 0 : index
      %43 = vector.load %arg8[%c0_31, %c0_32] : memref<1x128xf32, #tpu.memory_space<vmem>>, vector<1x128xf32>
      %c0_33 = arith.constant 0 : index
      %c0_34 = arith.constant 0 : index
      %c0_35 = arith.constant 0 : index
      %44 = vector.load %arg5[%c0_33, %c0_34, %c0_35] : memref<1x1x128xf32, #tpu.memory_space<vmem>>, vector<1x1x128xf32>
      %45 = vector.shape_cast %44 : vector<1x1x128xf32> to vector<1x128xf32>
      %46 = vector.shape_cast %43 : vector<1x128xf32> to vector<1x1x128xf32>
      tpu.vector_store %arg5[%c0_33, %c0_34, %c0_35], %46 {strides = array<i32>} : memref<1x1x128xf32, #tpu.memory_space<vmem>>, vector<1x1x128xf32>,
      %c0_36 = arith.constant 0 : index
      %c0_37 = arith.constant 0 : index
      %47 = vector.load %arg9[%c0_36, %c0_37] : memref<1x128xf32, #tpu.memory_space<vmem>>, vector<1x128xf32>
      %c0_38 = arith.constant 0 : index
      %c0_39 = arith.constant 0 : index
      %c0_40 = arith.constant 0 : index
      %48 = vector.load %arg6[%c0_38, %c0_39, %c0_40] : memref<1x1x128xf32, #tpu.memory_space<vmem>>, vector<1x1x128xf32>
      %49 = vector.shape_cast %48 : vector<1x1x128xf32> to vector<1x128xf32>
      %50 = vector.shape_cast %47 : vector<1x128xf32> to vector<1x1x128xf32>
      tpu.vector_store %arg6[%c0_38, %c0_39, %c0_40], %50 {strides = array<i32>} : memref<1x1x128xf32, #tpu.memory_space<vmem>>, vector<1x1x128xf32>,
    } else {
    }
    return
  }
  func.func @transform_0(%arg0: i32, %arg1: i32) -> (i32, i32, i32) {
    %c0_i32 = arith.constant 0 : i32
    %c0_i32_0 = arith.constant 0 : i32
    return %arg0, %arg1, %c0_i32 : i32, i32, i32
  }
  func.func @transform_1(%arg0: i32, %arg1: i32) -> (i32, i32, i32) {
    %c0_i32 = arith.constant 0 : i32
    %c0_i32_0 = arith.constant 0 : i32
    return %arg0, %arg1, %c0_i32 : i32, i32, i32
  }
  func.func @transform_2(%arg0: i32, %arg1: i32) -> (i32, i32, i32) {
    %c0_i32 = arith.constant 0 : i32
    %c0_i32_0 = arith.constant 0 : i32
    %c0_i32_1 = arith.constant 0 : i32
    return %arg0, %c0_i32, %c0_i32_0 : i32, i32, i32
  }
  func.func @transform_3(%arg0: i32, %arg1: i32) -> (i32, i32, i32) {
    %c0_i32 = arith.constant 0 : i32
    %c0_i32_0 = arith.constant 0 : i32
    %c0_i32_1 = arith.constant 0 : i32
    return %arg0, %c0_i32, %c0_i32_0 : i32, i32, i32
  }
  func.func @transform_4(%arg0: i32, %arg1: i32) -> (i32, i32, i32) {
    %c0_i32 = arith.constant 0 : i32
    %c0_i32_0 = arith.constant 0 : i32
    %c0_i32_1 = arith.constant 0 : i32
    return %arg0, %c0_i32, %c0_i32_0 : i32, i32, i32
  }
}

</mosaic_0001>

<bundles_post_ra>
// kernel: bce_dice_loss.1
= control target key start
LH: loop header
LB: loop body
LE: loop exit
PB: predicated region body
PF: predicated region fallthrough
CT: control target
= control target key end

     0   :  { %s547_s15 = smov 0   ;;  %s549_s16 = smov 0   ;;  %s595_s0 = inlined_call_operand.vmem [shape: f32[2,8,128], index: 0, kind: input, shape index: {}]   ;;  %s596_s1 = inlined_call_operand.vmem [shape: f32[2,8,128], index: 1, kind: input, shape index: {}]   ;;  %s597_s2 = inlined_call_operand.vmem [shape: f32[2,1,128], index: 2, kind: output, shape index: {0}]   ;;  %s598_s3 = inlined_call_operand.vmem [shape: f32[2,1,128], index: 3, kind: output, shape index: {1}]   ;;  %s599_s4 = inlined_call_operand.vmem [shape: f32[2,1,128], index: 4, kind: output, shape index: {2}]  }
   0x1   :  { %s551_s17 = smov 0  }
   0x2 LB: > { %s27_s18 = sadd.s32 1, %s515_s16  ;;  %p461_p0 = scmp.ge.s32.totalorder %s519_s17, 1  ;;  %s519_s17 = sphi %s551_s17, %s15_s17   ;;  %s515_s16 = sphi %s549_s16, %s601_s16   ;;  %s511_s15 = sphi %s547_s15, %s600_s15  }
   0x3   : > { %p29_p1 = scmp.ge.s32.totalorder %s27_s18, 2  ;;  %p197_p2 = scmp.lt.s32.totalorder %s519_s17, 3 }
   0x5   : > { %s603_s18 = smov (%p29_p1, %s27_s18), 0  ;;  %p198_p3 = pnand %p461_p0, %p197_p2 }
   0x6   : > { %p236_p4 = scmp.lt.s32.totalorder (!%p198_p3), %s511_s15, 1 }
   0x7   : > { %201 = sbr.rel (%p198_p3) target bundleno = 78 (0x4e), region = 28 }
   0xc   : > { %v521_v0 = vmov 0.0   ;;  %s605_s15 = smov (!%p236_p4, %s511_s15), 1 }
   0xd   : > { %263 = vst [vmem:[#allocation2] sm:$0x1] %v521_v0  ;;  %s462_s19 = sshll.u32 %s605_s15, 3  ;;  %s252_s28 = scalar_lea.vmem %s597_s2, %s605_s15 }
   0xe   : > { %264 = vst [vmem:[#allocation3] sm:$0x1] %v521_v0  ;;  %s242_s22 = scalar_lea.vmem %s595_s0, %s462_s19  ;;  %s249_s25 = scalar_lea.vmem %s596_s1, %s462_s19 }
   0xf   : > { %265 = vst [vmem:[#allocation4] sm:$0x1] %v521_v0  ;;  %v266_v1 = vld [vmem:[%s242_s22] sm:$0xff]  ;;  %s255_s5 = scalar_lea.vmem %s598_s3, %s605_s15  ;;  %s258_s8 = scalar_lea.vmem %s599_s4, %s605_s15 }
  0x10   : > { %v268_v2 = vand.u32 2147483647, %v266_v1  ;;  %v267_v6 = vld [vmem:[%s249_s25] sm:$0xff]  ;;  %v273_v8 = vmax.f32 %v266_v1, 0.0  ;;  %vm293_vm4 = vcmp.ge.f32.partialorder %v266_v1, 0.0 }
  0x11   : > { %v274_v9 = vmul.f32 %v267_v6, %v266_v1 }
  0x12   : > { %v269_v3 = vsub.f32 0.0, %v268_v2 }
  0x13   : > { %v275_v10 = vsub.f32 %v273_v8, %v274_v9 }
  0x14   : > { %v270_v4 = vmul.f32 1.442695, %v269_v3  ;;  %v296_v30 = vld [vmem:[#allocation2] sm:$0x1] }
  0x15   : > { %v305_v46 = vld [vmem:[#allocation3] sm:$0x1] }
  0x16   : > { %491 = vpow2.f32 %v270_v4  ;;  %v315_v47 = vld [vmem:[#allocation4] sm:$0x1] }
  0x1c   : > { %v492_v5 = vpop.eup %491 }
  0x1d   : > { %v272_v7 = vadd.f32 1.0, %v492_v5 }
  0x1f   : > { %493 = vlog2.f32 %v272_v7  ;;  %v290_v16 = vand.u32 2147483648, %v272_v7  ;;  %vm284_vm0 = vweird.f32 %v272_v7  ;;  %v288_v18 = vand.u32 2147483647, %v272_v7 }
  0x20   : > { %495 = vrcp.f32 %v272_v7 }
  0x21   : > { %v291_v22 = vor.u32 1.1754944e-38, %v290_v16  ;;  %vm289_vm3 = vcmp.eq.f32.partialorder %v288_v18, 8.507059e+37 }
  0x25   : > { %v494_v11 = vpop.eup %493 }
  0x26   : > { %v496_v12 = vpop.eup %495  ;;  %v277_v13 = vmul.f32 0.6931472, %v494_v11 }
  0x27   : > { %v280_v14 = vmul.f32 %v496_v12, %v272_v7  ;;  %vm285_vm1 = vweird.f32 %v496_v12 }
  0x28   : > { %v278_v15 = vadd.f32 %v277_v13, %v275_v10  ;;  %vm286_vm2 = vmor %vm284_vm0, %vm285_vm1 }
  0x29   : > { %v281_v17 = vsub.f32 1.0, %v280_v14 }
  0x2a   : > { %v297_v19 = vrot.slane %v278_v15, 4 }
  0x2b   : > { %v282_v20 = vmul.f32 %v496_v12, %v281_v17 }
  0x2c   : > { %v298_v21 = vadd.f32 %v297_v19, %v278_v15 }
  0x2d   : > { %v283_v23 = vadd.f32 %v496_v12, %v282_v20 }
  0x2e   : > { %v299_v24 = vrot.slane %v298_v21, 2 }
  0x2f   : > { %v287_v25 = vsel %vm286_vm2, %v496_v12, %v283_v23 }
  0x30   : > { %v300_v26 = vadd.f32 %v299_v24, %v298_v21  ;;  %v292_v27 = vsel %vm289_vm3, %v291_v22, %v287_v25 }
  0x31   : > { %v294_v28 = vmul.f32 %v492_v5, %v292_v27 }
  0x32   : > { %v301_v29 = vrot.slane %v300_v26, 1 }
  0x33   : > { %v295_v31 = vsel %vm293_vm4, %v292_v27, %v294_v28 }
  0x34   : > { %v302_v32 = vadd.f32 %v301_v29, %v300_v26  ;;  %v306_v33 = vmul.f32 %v295_v31, %v267_v6  ;;  %v316_v34 = vadd.f32 %v295_v31, %v267_v6 }
  0x36   : > { %v303_v35 = vadd.f32 %v302_v32, %v296_v30  ;;  %v307_v36 = vrot.slane %v306_v33, 4  ;;  %v317_v37 = vrot.slane %v316_v34, 4 }
  0x38   : > { %304 = vst [vmem:[#allocation2] sm:$0x1] %v303_v35  ;;  %v308_v38 = vadd.f32 %v307_v36, %v306_v33  ;;  %v318_v39 = vadd.f32 %v317_v37, %v316_v34 }
  0x3a   : > { %v309_v40 = vrot.slane %v308_v38, 2  ;;  %v319_v41 = vrot.slane %v318_v39, 2 }
  0x3c   : > { %v310_v42 = vadd.f32 %v309_v40, %v308_v38  ;;  %v320_v43 = vadd.f32 %v319_v41, %v318_v39 }
  0x3e   : > { %v311_v44 = vrot.slane %v310_v42, 1  ;;  %v321_v45 = vrot.slane %v320_v43, 1 }
  0x3f   : > { %v328_v48 = vld [vmem:[#allocation2] sm:$0x1] }
  0x40   : > { %v312_v49 = vadd.f32 %v311_v44, %v310_v42  ;;  %v322_v50 = vadd.f32 %v321_v45, %v320_v43  ;;  %329 = vst [vmem:[%s252_s28] sm:$0x1] %v328_v48 }
  0x42   : > { %v313_v51 = vadd.f32 %v312_v49, %v305_v46  ;;  %v323_v52 = vadd.f32 %v322_v50, %v315_v47 }
  0x44   : > { %314 = vst [vmem:[#allocation3] sm:$0x1] %v313_v51 }
  0x45   : > { %324 = vst [vmem:[#allocation4] sm:$0x1] %v323_v52 }
  0x4b   : > { %v330_v53 = vld [vmem:[#allocation3] sm:$0x1] }
  0x4c   : > { %331 = vst [vmem:[%s255_s5] sm:$0x1] %v330_v53  ;;  %v332_v54 = vld [vmem:[#allocation4] sm:$0x1] }
  0x4d   : > { %333 = vst [vmem:[%s258_s8] sm:$0x1] %v332_v54 }
  0x4e PF: > { %s15_s17 = sadd.s32 1, %s519_s17   ;;  %s600_s15 = smov %s515_s16 }
  0x4f   : > { %p12_p5 = scmp.ge.s32.totalorder %s15_s17, 4   ;;  %s601_s16 = smov %s603_s18 }
  0x51   :  { %14 = sbr.rel (!%p12_p5) target bundleno = 2 (0x2), region = 93 }

</bundles_post_ra>
